<compile_context>
chip_gen: v7x
topology: tpu7x:2x2x1
jax: 0.10.0
libtpu: 0.0.40
codegen_flags: <defaults>
</compile_context>

<pallas_src>
import jax
import jax.numpy as jnp
from jax import lax
from jax.experimental import pallas as pl
from jax.experimental.pallas import tpu as pltpu

# Problem sizes (small, consistent with the module).
N = 2                      # batch
C_IN = 4                   # in_channels
C_OUT = 8                  # out_channels
H = W = 16                 # spatial
H2 = (H + 2 - 3) // 2 + 1  # 8   (3x3, stride 2, pad 1)
W2 = (W + 2 - 3) // 2 + 1  # 8
EPS = 1e-5                 # nn.BatchNorm2d default

LW1 = (W + 2) * C_IN       # 72   conv1 padded-row lane width   (w_pad, c_in)
K1 = 3 * LW1               # 216  conv1 im2col K (3 H-taps stacked along lanes)
LY = W * C_OUT             # 128  activation lane width (w, c_out) -> lane dense
LO = W2 * C_OUT            # 64   output lane width     (j, c_out)
NH = N * H                 # 32   activation rows (n, h)
NH2 = N * H2               # 16   output rows     (n, i)


# ---------------------------------------------------------------------------
# Single fused kernel: conv1 + BN batch stats + BN affine + ReLU + conv2/s2.
# ---------------------------------------------------------------------------
def fused_kernel(xi_ref, bw1_ref, params_ref, sel_ref, bw2_ref, out_ref):
    f32 = jnp.float32

    # ---- conv1 (3x3, stride 1, pad 1): one banded matmul, M=32, K=216, N=128 -----
    # xi_ref rows are (n, h) with the 3 ky padded-row slices concatenated on lanes;
    # bw1_ref is the matching (216, 128) stacked banded weight matrix.
    y1 = jnp.dot(xi_ref[...], bw1_ref[...], preferred_element_type=f32)  # (32, 128)
    # conv1 bias intentionally omitted: it cancels exactly in (y1 - batch_mean).

    # ---- BatchNorm2d batch statistics (training-mode forward) --------------------
    # Lanes are (w, o) with o minor.  Column-reduce rows, then fold the 16 W-groups
    # and broadcast back per lane with a roll-and-add tree on the XLU (shifts are
    # multiples of C_OUT=8, covering all 16 groups after 4 steps).
    col = jnp.concatenate(
        [jnp.sum(y1, axis=0, keepdims=True),
         jnp.sum(y1 * y1, axis=0, keepdims=True)], axis=0)               # (2, 128)
    for sh in (64, 32, 16, 8):
        col = col + pltpu.roll(col, shift=sh, axis=1)
    inv_cnt = 1.0 / float(N * H * W)
    mean_l = col[0:1, :] * inv_cnt                                       # (1, 128)
    ex2_l = col[1:2, :] * inv_cnt
    var_l = ex2_l - mean_l * mean_l          # biased var (PyTorch BN normalization)

    p = params_ref[...]                      # (8, 128): row0=gamma, row1=beta, row2=b2
    scale_l = p[0:1, :] * lax.rsqrt(var_l + EPS)
    shift_l = p[1:2, :] - mean_l * scale_l

    # ---- BN affine + ReLU (before padding, so conv2's zero pad needs no mask) ----
    a = jnp.maximum(y1 * scale_l + shift_l, 0.0)                         # (32, 128)

    # ---- conv2 (3x3, stride 2, pad 1) --------------------------------------------
    # H taps / stride / zero-pad: one stacked 0/1 row-gather matmul (48, 32)x(32,128)
    # built in the wrapper.  W taps / stride / zero-pad are folded into bw2_ref[ky].
    rows = jnp.dot(sel_ref[...], a, preferred_element_type=f32)          # (48, 128)
    acc2 = jnp.dot(rows[0:NH2, :], bw2_ref[0], preferred_element_type=f32)
    acc2 = acc2 + jnp.dot(rows[NH2:2 * NH2, :], bw2_ref[1], preferred_element_type=f32)
    acc2 = acc2 + jnp.dot(rows[2 * NH2:3 * NH2, :], bw2_ref[2], preferred_element_type=f32)
    out_ref[...] = acc2 + p[2:3, 0:LO]                                   # + conv2 bias


# ---------------------------------------------------------------------------
# Wrapper-side weight repacking (banded matrices along W; done once per weights).
# ---------------------------------------------------------------------------
def _banded_conv1_weights(w1):
    """w1: (C_OUT, C_IN, 3, 3) OIHW -> (3*LW1, LY); taps over padded W, stacked ky."""
    wt = jnp.transpose(w1, (2, 3, 1, 0)).astype(jnp.float32)     # (ky, kx, c, o)
    w_in = jnp.arange(W + 2)
    w_out = jnp.arange(W)
    mats = []
    for ky in range(3):
        m = jnp.zeros((W + 2, C_IN, W, C_OUT), jnp.float32)
        for kx in range(3):
            band = (w_in[:, None] == (w_out[None, :] + kx)).astype(jnp.float32)
            m = m + band[:, None, :, None] * wt[ky, kx][None, :, None, :]
        mats.append(m.reshape(LW1, LY))
    return jnp.concatenate(mats, axis=0)                         # (216, 128)


def _banded_conv2_weights(w2):
    """w2: (C_OUT, C_OUT, 3, 3) OIHW -> (3, W*C_OUT, W2*C_OUT).
    Stride-2 sampling and W zero-padding folded in (out-of-range taps drop out)."""
    wt = jnp.transpose(w2, (2, 3, 1, 0)).astype(jnp.float32)     # (ky, kx, c, o)
    w_in = jnp.arange(W)                                         # unpadded activation col
    j_out = jnp.arange(W2)
    mats = []
    for ky in range(3):
        m = jnp.zeros((W, C_OUT, W2, C_OUT), jnp.float32)
        for kx in range(3):
            band = (w_in[:, None] == (2 * j_out[None, :] + kx - 1)).astype(jnp.float32)
            m = m + band[:, None, :, None] * wt[ky, kx][None, :, None, :]
        mats.append(m.reshape(LY, LO))
    return jnp.stack(mats, axis=0)                               # (3, 128, 64)


def _conv2_row_select():
    """(3*NH2, NH) stacked 0/1 gather matrices for conv2's H taps / stride-2 / pad."""
    pi = jnp.arange(NH2)                  # output row (n*H2 + i)
    qi = jnp.arange(NH)                   # activation row (n*H + h)
    n_idx = pi // H2
    i_idx = pi % H2
    mats = []
    for ky in range(3):
        h = 2 * i_idx + ky - 1
        valid = (h >= 0) & (h < H)        # out-of-range == zero pad (ReLU'd zeros)
        tgt = n_idx * H + h
        sel = ((qi[None, :] == tgt[:, None]) & valid[:, None]).astype(jnp.float32)
        mats.append(sel)                  # (16, 32)
    return jnp.concatenate(mats, axis=0)  # (48, 32)


@jax.jit
def downsample_connection(x_nchw, w1, b1, gamma, beta, w2, b2):
    # b1 is accepted to match the module signature but has no effect on the output:
    # a conv bias before training-mode BatchNorm cancels exactly in (y - mean).
    del b1

    # ---- layout / padding / im2col / weight repacking glue (tiny, fused by XLA) --
    x = jnp.transpose(x_nchw, (0, 2, 3, 1)).astype(jnp.float32)          # NHWC
    xp = jnp.pad(x, ((0, 0), (1, 1), (1, 1), (0, 0)))                    # (N, H+2, W+2, C)
    xp2 = xp.reshape(N, H + 2, LW1)                                      # lanes=(w_pad,c)
    xi = jnp.concatenate([xp2[:, 0:H], xp2[:, 1:H + 1], xp2[:, 2:H + 2]],
                         axis=-1).reshape(NH, K1)                        # (32, 216)

    bw1 = _banded_conv1_weights(w1)                                      # (216, 128)
    bw2 = _banded_conv2_weights(w2)                                      # (3, 128, 64)
    sel = _conv2_row_select()                                            # (48, 32)

    # Pack all 1-row side inputs into a single aligned (8, 128) buffer.
    params = jnp.zeros((8, 128), jnp.float32)
    params = params.at[0, :].set(jnp.tile(gamma.astype(jnp.float32), W))
    params = params.at[1, :].set(jnp.tile(beta.astype(jnp.float32), W))
    params = params.at[2, :LO].set(jnp.tile(b2.astype(jnp.float32), W2))

    # ---- single fused Pallas call -------------------------------------------------
    out2d = pl.pallas_call(
        fused_kernel,
        out_shape=jax.ShapeDtypeStruct((NH2, LO), jnp.float32),
        grid=(1,),
        in_specs=[
            pl.BlockSpec((NH, K1), lambda i: (0, 0)),
            pl.BlockSpec((K1, LY), lambda i: (0, 0)),
            pl.BlockSpec((8, 128), lambda i: (0, 0)),
            pl.BlockSpec((3 * NH2, NH), lambda i: (0, 0)),
            pl.BlockSpec((3, LY, LO), lambda i: (0, 0, 0)),
        ],
        out_specs=pl.BlockSpec((NH2, LO), lambda i: (0, 0)),
        compiler_params=pltpu.CompilerParams(dimension_semantics=("arbitrary",)),
        cost_estimate=pl.CostEstimate(flops=2_950_000, transcendentals=128,
                                      bytes_accessed=251_000),
    )(xi, bw1, params, sel, bw2)

    out = out2d.reshape(N, H2, W2, C_OUT)                # rows (n, i), lanes (j, o)
    return jnp.transpose(out, (0, 3, 1, 2))              # NCHW (4 KB, single XLA op)


# ---------------------------------------------------------------------------
# Pure-JAX reference (mirrors the PyTorch forward, training-mode BatchNorm).
# ---------------------------------------------------------------------------
def reference(x, w1, b1, gamma, beta, w2, b2):
    dn = ("NCHW", "OIHW", "NCHW")
    y = lax.conv_general_dilated(x, w1, (1, 1), [(1, 1), (1, 1)],
                                 dimension_numbers=dn) + b1[None, :, None, None]
    mean = jnp.mean(y, axis=(0, 2, 3))
    var = jnp.var(y, axis=(0, 2, 3))
    y = (y - mean[None, :, None, None]) / jnp.sqrt(var + EPS)[None, :, None, None]
    y = y * gamma[None, :, None, None] + beta[None, :, None, None]
    y = jnp.maximum(y, 0.0)
    y = lax.conv_general_dilated(y, w2, (2, 2), [(1, 1), (1, 1)],
                                 dimension_numbers=dn) + b2[None, :, None, None]
    return y


if __name__ == "__main__":
    key = jax.random.PRNGKey(0)
    k = jax.random.split(key, 7)
    x = jax.random.normal(k[0], (N, C_IN, H, W), jnp.float32)
    w1 = jax.random.normal(k[1], (C_OUT, C_IN, 3, 3), jnp.float32) * 0.1
    b1 = jax.random.normal(k[2], (C_OUT,), jnp.float32) * 0.1
    gamma = jax.random.uniform(k[3], (C_OUT,), jnp.float32, 0.5, 1.5)
    beta = jax.random.normal(k[4], (C_OUT,), jnp.float32) * 0.1
    w2 = jax.random.normal(k[5], (C_OUT, C_OUT, 3, 3), jnp.float32) * 0.1
    b2 = jax.random.normal(k[6], (C_OUT,), jnp.float32) * 0.1

    out = downsample_connection(x, w1, b1, gamma, beta, w2, b2)
    out = jax.block_until_ready(out)

    ref = reference(x, w1, b1, gamma, beta, w2, b2)
    assert out.shape == (N, C_OUT, H2, W2), out.shape
    max_err = float(jnp.max(jnp.abs(out - ref)))
    assert jnp.allclose(out, ref, rtol=1e-3, atol=2e-3), max_err

    print("KERNEL_OK")
</pallas_src>

<mosaic_0001>
module attributes {stable_mosaic.version = 11 : i64} {
  func.func @fused_kernel(%arg0: i32, %arg1: memref<32x216xf32, #tpu.memory_space<vmem>>, %arg2: memref<216x128xf32, #tpu.memory_space<vmem>>, %arg3: memref<8x128xf32, #tpu.memory_space<vmem>>, %arg4: memref<48x32xf32, #tpu.memory_space<vmem>>, %arg5: memref<3x128x64xf32, #tpu.memory_space<vmem>>, %arg6: memref<16x64xf32, #tpu.memory_space<vmem>>) attributes {dimension_semantics = [#tpu.dimension_semantics<arbitrary>], iteration_bounds = array<i64: 1>, scalar_prefetch = 0 : i64, scratch_operands = 0 : i64, tpu.core_type = #tpu.core_type<tc>, window_params = [{pipeline_mode = #tpu.pipeline_mode<synchronous>, transform_indices = @transform_0, window_bounds = array<i64: 32, 216>}, {pipeline_mode = #tpu.pipeline_mode<synchronous>, transform_indices = @transform_1, window_bounds = array<i64: 216, 128>}, {pipeline_mode = #tpu.pipeline_mode<synchronous>, transform_indices = @transform_2, window_bounds = array<i64: 8, 128>}, {pipeline_mode = #tpu.pipeline_mode<synchronous>, transform_indices = @transform_3, window_bounds = array<i64: 48, 32>}, {pipeline_mode = #tpu.pipeline_mode<synchronous>, transform_indices = @transform_4, window_bounds = array<i64: 3, 128, 64>}, {pipeline_mode = #tpu.pipeline_mode<synchronous>, transform_indices = @transform_5, window_bounds = array<i64: 16, 64>}]} {
    %c0 = arith.constant 0 : index
    %c0_0 = arith.constant 0 : index
    %0 = vector.load %arg1[%c0, %c0_0] : memref<32x216xf32, #tpu.memory_space<vmem>>, vector<32x216xf32>
    %c0_1 = arith.constant 0 : index
    %c0_2 = arith.constant 0 : index
    %1 = vector.load %arg2[%c0_1, %c0_2] : memref<216x128xf32, #tpu.memory_space<vmem>>, vector<216x128xf32>
    %cst = arith.constant dense<0.000000e+00> : vector<32x128xf32>
    %2 = tpu.matmul %0, %1, %cst {dimension_numbers = #tpu.dot_dimension_numbers<[1], [0], [0], [1], [0, 0, 1, 1], [], []>} : vector<32x216xf32>, vector<216x128xf32>, vector<32x128xf32> -> vector<32x128xf32>
    %cst_3 = arith.constant dense<0.000000e+00> : vector<128xf32>
    %3 = vector.multi_reduction <add>, %2, %cst_3 [0] : vector<32x128xf32> to vector<128xf32>
    %4 = vector.shape_cast %3 : vector<128xf32> to vector<1x128xf32>
    %5 = arith.mulf %2, %2 : vector<32x128xf32>
    %cst_4 = arith.constant dense<0.000000e+00> : vector<128xf32>
    %6 = vector.multi_reduction <add>, %5, %cst_4 [0] : vector<32x128xf32> to vector<128xf32>
    %7 = vector.shape_cast %6 : vector<128xf32> to vector<1x128xf32>
    %8 = tpu.concatenate %4, %7 in 0 : vector<1x128xf32>, vector<1x128xf32> -> vector<2x128xf32>
    %c64_i32 = arith.constant 64 : i32
    %9 = tpu.dynamic_rotate %8 by %c64_i32 dim 1 : vector<2x128xf32>, i32 -> vector<2x128xf32>
    %10 = arith.addf %8, %9 : vector<2x128xf32>
    %c32_i32 = arith.constant 32 : i32
    %11 = tpu.dynamic_rotate %10 by %c32_i32 dim 1 : vector<2x128xf32>, i32 -> vector<2x128xf32>
    %12 = arith.addf %10, %11 : vector<2x128xf32>
    %c16_i32 = arith.constant 16 : i32
    %13 = tpu.dynamic_rotate %12 by %c16_i32 dim 1 : vector<2x128xf32>, i32 -> vector<2x128xf32>
    %14 = arith.addf %12, %13 : vector<2x128xf32>
    %c8_i32 = arith.constant 8 : i32
    %15 = tpu.dynamic_rotate %14 by %c8_i32 dim 1 : vector<2x128xf32>, i32 -> vector<2x128xf32>
    %16 = arith.addf %14, %15 : vector<2x128xf32>
    %17 = vector.extract_strided_slice %16 {offsets = [0, 0], sizes = [1, 128], strides = [1, 1]} : vector<2x128xf32> to vector<1x128xf32>
    %cst_5 = arith.constant 0.001953125 : f32
    %18 = vector.broadcast %cst_5 : f32 to vector<1x128xf32>
    %19 = arith.mulf %17, %18 : vector<1x128xf32>
    %20 = vector.extract_strided_slice %16 {offsets = [1, 0], sizes = [1, 128], strides = [1, 1]} : vector<2x128xf32> to vector<1x128xf32>
    %cst_6 = arith.constant 0.001953125 : f32
    %21 = vector.broadcast %cst_6 : f32 to vector<1x128xf32>
    %22 = arith.mulf %20, %21 : vector<1x128xf32>
    %23 = arith.mulf %19, %19 : vector<1x128xf32>
    %24 = arith.subf %22, %23 : vector<1x128xf32>
    %c0_7 = arith.constant 0 : index
    %c0_8 = arith.constant 0 : index
    %25 = vector.load %arg3[%c0_7, %c0_8] : memref<8x128xf32, #tpu.memory_space<vmem>>, vector<8x128xf32>
    %26 = vector.extract_strided_slice %25 {offsets = [0, 0], sizes = [1, 128], strides = [1, 1]} : vector<8x128xf32> to vector<1x128xf32>
    %cst_9 = arith.constant 9.99999974E-6 : f32
    %27 = vector.broadcast %cst_9 : f32 to vector<1x128xf32>
    %28 = arith.addf %24, %27 : vector<1x128xf32>
    %29 = math.rsqrt %28 : vector<1x128xf32>
    %30 = arith.mulf %26, %29 : vector<1x128xf32>
    %31 = vector.extract_strided_slice %25 {offsets = [1, 0], sizes = [1, 128], strides = [1, 1]} : vector<8x128xf32> to vector<1x128xf32>
    %32 = arith.mulf %19, %30 : vector<1x128xf32>
    %33 = arith.subf %31, %32 : vector<1x128xf32>
    %34 = vector.broadcast %30 : vector<1x128xf32> to vector<32x128xf32>
    %35 = arith.mulf %2, %34 : vector<32x128xf32>
    %36 = vector.broadcast %33 : vector<1x128xf32> to vector<32x128xf32>
    %37 = arith.addf %35, %36 : vector<32x128xf32>
    %cst_10 = arith.constant 0.000000e+00 : f32
    %38 = vector.broadcast %cst_10 : f32 to vector<32x128xf32>
    %39 = arith.maximumf %37, %38 : vector<32x128xf32>
    %c0_11 = arith.constant 0 : index
    %c0_12 = arith.constant 0 : index
    %40 = vector.load %arg4[%c0_11, %c0_12] : memref<48x32xf32, #tpu.memory_space<vmem>>, vector<48x32xf32>
    %cst_13 = arith.constant dense<0.000000e+00> : vector<48x128xf32>
    %41 = tpu.matmul %40, %39, %cst_13 {dimension_numbers = #tpu.dot_dimension_numbers<[1], [0], [0], [1], [0, 0, 1, 1], [], []>} : vector<48x32xf32>, vector<32x128xf32>, vector<48x128xf32> -> vector<48x128xf32>
    %42 = vector.extract_strided_slice %41 {offsets = [0, 0], sizes = [16, 128], strides = [1, 1]} : vector<48x128xf32> to vector<16x128xf32>
    %c0_14 = arith.constant 0 : index
    %c0_15 = arith.constant 0 : index
    %c0_16 = arith.constant 0 : index
    %43 = vector.load %arg5[%c0_14, %c0_15, %c0_16] : memref<3x128x64xf32, #tpu.memory_space<vmem>>, vector<1x128x64xf32>
    %44 = vector.shape_cast %43 : vector<1x128x64xf32> to vector<128x64xf32>
    %cst_17 = arith.constant dense<0.000000e+00> : vector<16x64xf32>
    %45 = tpu.matmul %42, %44, %cst_17 {dimension_numbers = #tpu.dot_dimension_numbers<[1], [0], [0], [1], [0, 0, 1, 1], [], []>} : vector<16x128xf32>, vector<128x64xf32>, vector<16x64xf32> -> vector<16x64xf32>
    %46 = vector.extract_strided_slice %41 {offsets = [16, 0], sizes = [16, 128], strides = [1, 1]} : vector<48x128xf32> to vector<16x128xf32>
    %c1 = arith.constant 1 : index
    %c0_18 = arith.constant 0 : index
    %c0_19 = arith.constant 0 : index
    %47 = vector.load %arg5[%c1, %c0_18, %c0_19] : memref<3x128x64xf32, #tpu.memory_space<vmem>>, vector<1x128x64xf32>
    %48 = vector.shape_cast %47 : vector<1x128x64xf32> to vector<128x64xf32>
    %cst_20 = arith.constant dense<0.000000e+00> : vector<16x64xf32>
    %49 = tpu.matmul %46, %48, %cst_20 {dimension_numbers = #tpu.dot_dimension_numbers<[1], [0], [0], [1], [0, 0, 1, 1], [], []>} : vector<16x128xf32>, vector<128x64xf32>, vector<16x64xf32> -> vector<16x64xf32>
    %50 = arith.addf %45, %49 : vector<16x64xf32>
    %51 = vector.extract_strided_slice %41 {offsets = [32, 0], sizes = [16, 128], strides = [1, 1]} : vector<48x128xf32> to vector<16x128xf32>
    %c2 = arith.constant 2 : index
    %c0_21 = arith.constant 0 : index
    %c0_22 = arith.constant 0 : index
    %52 = vector.load %arg5[%c2, %c0_21, %c0_22] : memref<3x128x64xf32, #tpu.memory_space<vmem>>, vector<1x128x64xf32>
    %53 = vector.shape_cast %52 : vector<1x128x64xf32> to vector<128x64xf32>
    %cst_23 = arith.constant dense<0.000000e+00> : vector<16x64xf32>
    %54 = tpu.matmul %51, %53, %cst_23 {dimension_numbers = #tpu.dot_dimension_numbers<[1], [0], [0], [1], [0, 0, 1, 1], [], []>} : vector<16x128xf32>, vector<128x64xf32>, vector<16x64xf32> -> vector<16x64xf32>
    %55 = arith.addf %50, %54 : vector<16x64xf32>
    %56 = vector.extract_strided_slice %25 {offsets = [2, 0], sizes = [1, 64], strides = [1, 1]} : vector<8x128xf32> to vector<1x64xf32>
    %57 = vector.broadcast %56 : vector<1x64xf32> to vector<16x64xf32>
    %58 = arith.addf %55, %57 : vector<16x64xf32>
    %c0_24 = arith.constant 0 : index
    %c0_25 = arith.constant 0 : index
    %59 = vector.load %arg6[%c0_24, %c0_25] : memref<16x64xf32, #tpu.memory_space<vmem>>, vector<16x64xf32>
    tpu.vector_store %arg6[%c0_24, %c0_25], %58 {strides = array<i32>} : memref<16x64xf32, #tpu.memory_space<vmem>>, vector<16x64xf32>,
    return
  }
  func.func @transform_0(%arg0: i32) -> (i32, i32) {
    %c0_i32 = arith.constant 0 : i32
    %c0_i32_0 = arith.constant 0 : i32
    %c0_i32_1 = arith.constant 0 : i32
    return %c0_i32, %c0_i32_0 : i32, i32
  }
  func.func @transform_1(%arg0: i32) -> (i32, i32) {
    %c0_i32 = arith.constant 0 : i32
    %c0_i32_0 = arith.constant 0 : i32
    %c0_i32_1 = arith.constant 0 : i32
    return %c0_i32, %c0_i32_0 : i32, i32
  }
  func.func @transform_2(%arg0: i32) -> (i32, i32) {
    %c0_i32 = arith.constant 0 : i32
    %c0_i32_0 = arith.constant 0 : i32
    %c0_i32_1 = arith.constant 0 : i32
    return %c0_i32, %c0_i32_0 : i32, i32
  }
  func.func @transform_3(%arg0: i32) -> (i32, i32) {
    %c0_i32 = arith.constant 0 : i32
    %c0_i32_0 = arith.constant 0 : i32
    %c0_i32_1 = arith.constant 0 : i32
    return %c0_i32, %c0_i32_0 : i32, i32
  }
  func.func @transform_4(%arg0: i32) -> (i32, i32, i32) {
    %c0_i32 = arith.constant 0 : i32
    %c0_i32_0 = arith.constant 0 : i32
    %c0_i32_1 = arith.constant 0 : i32
    %c0_i32_2 = arith.constant 0 : i32
    return %c0_i32, %c0_i32_0, %c0_i32_1 : i32, i32, i32
  }
  func.func @transform_5(%arg0: i32) -> (i32, i32) {
    %c0_i32 = arith.constant 0 : i32
    %c0_i32_0 = arith.constant 0 : i32
    %c0_i32_1 = arith.constant 0 : i32
    return %c0_i32, %c0_i32_0 : i32, i32
  }
}

</mosaic_0001>

<bundles_post_ra>
// kernel: tile.18
= control target key start
LH: loop header
LB: loop body
LE: loop exit
PB: predicated region body
PF: predicated region fallthrough
CT: control target
= control target key end

     0   :  { %s28_s0 = inlined_call_operand.vmem [shape: f32[8], index: 0, kind: input, shape index: {}]   ;;  %s29_s1 = inlined_call_operand.vmem [shape: f32[16,8], index: 1, kind: output, shape index: {}]  }
   0x1   :  { %v4_v0 = vld [vmem:[%s28_s0] ss:$0 sm:$0xff] }
   0x2   :  { %5 = vst [vmem:[%s29_s1] sm:$0xff] %v4_v0  ;;  %8 = vst [vmem:[%s29_s1 + $0x8] sm:$0xff] %v4_v0 }

// kernel: tile.28
= control target key start
LH: loop header
LB: loop body
LE: loop exit
PB: predicated region body
PF: predicated region fallthrough
CT: control target
= control target key end

     0   :  { %s22_s0 = inlined_call_operand.vmem [shape: f32[8], index: 0, kind: input, shape index: {}]   ;;  %s23_s1 = inlined_call_operand.vmem [shape: f32[8,8], index: 1, kind: output, shape index: {}]  }
   0x1   :  { %v4_v0 = vld [vmem:[%s22_s0] ss:$0 sm:$0xff] }
   0x2   :  { %5 = vst [vmem:[%s23_s1] sm:$0xff] %v4_v0 }

// kernel: downsample_connection.1
= control target key start
LH: loop header
LB: loop body
LE: loop exit
PB: predicated region body
PF: predicated region fallthrough
CT: control target
= control target key end

     0   :  { %v1020_v0 = vmov 0.0|0.0   ;;  %vm55_vm0 = vcmask 719872   ;;  %v1021_v41 = vmov 0.0   ;;  %vm175_vm1 = vcmask 1040384   ;;  %s1023_s12 = smov 32   ;;  %s1024_s13 = smov 16   ;;  %s1389_s1 = inlined_call_operand.vmem [shape: f32[216,128], index: 1, kind: input, shape index: {}]   ;;  %s1390_s0 = inlined_call_operand.vmem [shape: f32[32,216], index: 0, kind: input, shape index: {}]   ;;  %s1391_s3 = inlined_call_operand.vmem [shape: f32[48,32], index: 3, kind: input, shape index: {}]   ;;  %s1392_s4 = inlined_call_operand.vmem [shape: f32[3,128,64], index: 4, kind: input, shape index: {}]   ;;  %s1393_s2 = inlined_call_operand.vmem [shape: f32[8,128], index: 2, kind: input, shape index: {}]   ;;  %s1394_s5 = inlined_call_operand.vmem [shape: f32[16,64], index: 5, kind: output, shape index: {}]  }
   0x1   :  { %865 = vmatprep.subr.bf16.mxu0 %v1020_v0  ;;  %v28_v1 = vld [vmem:[%s1389_s1] sm:$0xff]  ;;  %v29_v2 = vld [vmem:[%s1389_s1 + $0x8] sm:$0xff]  ;;  %v30_v3 = vld [vmem:[%s1389_s1 + $0x10] sm:$0xff]  ;;  %s1025_s14 = smov 8   ;;  %vm233_vm2 = vcmask 261120   ;;  %vm630_vm3 = vcmask 523264  }
   0x2   :  { %v866_v4 = vpack.c.bf16 %v29_v2, %v28_v1  ;;  %v31_v5 = vld [vmem:[%s1389_s1 + $0x18] sm:$0xff]  ;;  %v32_v7 = vld [vmem:[%s1389_s1 + $0x20] sm:$0xff]  ;;  %v33_v8 = vld [vmem:[%s1389_s1 + $0x28] sm:$0xff] }
   0x3   :  { %v869_v6 = vpack.c.bf16 %v31_v5, %v30_v3  ;;  %v872_v9 = vpack.c.bf16 %v33_v8, %v32_v7  ;;  %v34_v10 = vld [vmem:[%s1389_s1 + $0x30] sm:$0xff]  ;;  %v35_v11 = vld [vmem:[%s1389_s1 + $0x38] sm:$0xff]  ;;  %v21_v12 = vld [vmem:[%s1390_s0 + $0x8] sm:$0xff] }
   0x4   :  { %867 = vmatpush1.bf16.msra.mxu0 %v866_v4  ;;  %637 = vmatprep.mubr.msk.f32.mxu0 %vm55_vm0, %v21_v12  ;;  %v875_v13 = vpack.c.bf16 %v35_v11, %v34_v10  ;;  %v36_v14 = vld [vmem:[%s1389_s1 + $0x40] sm:$0xff]  ;;  %v37_v15 = vld [vmem:[%s1389_s1 + $0x48] sm:$0xff]  ;;  %v38_v17 = vld [vmem:[%s1389_s1 + $0x50] sm:$0xff] }
   0x5   :  { %868 = vmatprep.subr.bf16.mxu0 %v1020_v0  ;;  %v878_v16 = vpack.c.bf16 %v37_v15, %v36_v14  ;;  %v39_v18 = vld [vmem:[%s1389_s1 + $0x58] sm:$0xff]  ;;  %v40_v20 = vld [vmem:[%s1389_s1 + $0x60] sm:$0xff]  ;;  %v41_v21 = vld [vmem:[%s1389_s1 + $0x68] sm:$0xff] }
   0x6   :  { %v881_v19 = vpack.c.bf16 %v39_v18, %v38_v17  ;;  %v884_v22 = vpack.c.bf16 %v41_v21, %v40_v20  ;;  %v42_v23 = vld [vmem:[%s1389_s1 + $0x70] sm:$0xff]  ;;  %v43_v24 = vld [vmem:[%s1389_s1 + $0x78] sm:$0xff]  ;;  %v44_v26 = vld [vmem:[%s1389_s1 + $0x80] sm:$0xff] }
   0x7   :  { %v887_v25 = vpack.c.bf16 %v43_v24, %v42_v23  ;;  %v45_v27 = vld [vmem:[%s1389_s1 + $0x88] sm:$0xff]  ;;  %v46_v29 = vld [vmem:[%s1389_s1 + $0x90] sm:$0xff]  ;;  %v47_v30 = vld [vmem:[%s1389_s1 + $0x98] sm:$0xff] }
   0x8   :  { %870 = vmatpush1.bf16.msra.mxu0 %v869_v6  ;;  %v890_v28 = vpack.c.bf16 %v45_v27, %v44_v26  ;;  %v893_v31 = vpack.c.bf16 %v47_v30, %v46_v29  ;;  %v48_v32 = vld [vmem:[%s1389_s1 + $0xa0] sm:$0xff]  ;;  %v49_v33 = vld [vmem:[%s1389_s1 + $0xa8] sm:$0xff]  ;;  %v50_v35 = vld [vmem:[%s1389_s1 + $0xb0] sm:$0xff] }
   0x9   :  { %871 = vmatprep.subr.bf16.mxu0 %v1020_v0  ;;  %v896_v34 = vpack.c.bf16 %v49_v33, %v48_v32  ;;  %v51_v36 = vld [vmem:[%s1389_s1 + $0xb8] sm:$0xff]  ;;  %v52_v38 = vld [vmem:[%s1389_s1 + $0xc0] sm:$0xff]  ;;  %v53_v39 = vld [vmem:[%s1389_s1 + $0xc8] sm:$0xff] }
   0xa   :  { %v899_v37 = vpack.c.bf16 %v51_v36, %v50_v35  ;;  %v902_v40 = vpack.c.bf16 %v53_v39, %v52_v38  ;;  %v54_v42 = vld [vmem:[%s1389_s1 + $0xd0] sm:$0xff]  ;;  %v20_v43 = vld [vmem:[%s1390_s0] sm:$0xff]  ;;  %v23_v44 = vld [vmem:[%s1390_s0 + $0x18] sm:$0xff] }
   0xb   :  { %v22_v45 = vld [vmem:[%s1390_s0 + $0x10] sm:$0xff]  ;;  %v25_v46 = vld [vmem:[%s1390_s0 + $0x28] sm:$0xff]  ;;  %v24_v47 = vld [vmem:[%s1390_s0 + $0x20] sm:$0xff] }
   0xc   :  { %873 = vmatpush1.bf16.msra.mxu0 %v872_v9  ;;  %v27_v48 = vld [vmem:[%s1390_s0 + $0x38] sm:$0xff]  ;;  %v26_v49 = vld [vmem:[%s1390_s0 + $0x30] sm:$0xff]  ;;  %s1022_s0 = smov 64   ;;  %v227_v23 = vld [vmem:[%s1391_s3] sm:$0xff] }
   0xd   :  { %874 = vmatprep.subr.bf16.mxu0 %v1020_v0  ;;  %751 = vmatprep.mubr.msk.f32.mxu1 %vm233_vm2, %v227_v23  ;;  %v647_v24 = vld [vmem:[%s1392_s4 + $0x80] sm:$0xff]  ;;  %v649_v27 = vld [vmem:[%s1392_s4 + $0x90] sm:$0xff] }
   0xe   :  { %v359_v23 = vld [vmem:[%s1392_s4 + $0x60] sm:$0xff] }
  0x10   :  { %876 = vmatpush1.bf16.msra.mxu0 %v875_v13 }
  0x11   :  { %877 = vmatprep.subr.bf16.mxu0 %v1020_v0 }
  0x14   :  { %879 = vmatpush1.bf16.msra.mxu0 %v878_v16 }
  0x15   :  { %880 = vmatprep.subr.bf16.mxu0 %v1020_v0 }
  0x18   :  { %882 = vmatpush1.bf16.msra.mxu0 %v881_v19 }
  0x19   :  { %883 = vmatprep.subr.bf16.mxu0 %v1020_v0 }
  0x1c   :  { %885 = vmatpush1.bf16.msra.mxu0 %v884_v22 }
  0x1d   :  { %886 = vmatprep.subr.bf16.mxu0 %v1020_v0 }
  0x20   :  { %888 = vmatpush1.bf16.msra.mxu0 %v887_v25  ;;  %v648_v25 = vld [vmem:[%s1392_s4 + $0x88] sm:$0xff] }
  0x21   :  { %889 = vmatprep.subr.bf16.mxu0 %v1020_v0  ;;  %v912_v26 = vpack.c.bf16 %v648_v25, %v647_v24  ;;  %v360_v24 = vld [vmem:[%s1392_s4 + $0x68] sm:$0xff] }
  0x22   :  { %v968_v25 = vpack.c.bf16 %v360_v24, %v359_v23 }
  0x24   :  { %891 = vmatpush1.bf16.msra.mxu0 %v890_v28  ;;  %v650_v28 = vld [vmem:[%s1392_s4 + $0x98] sm:$0xff] }
  0x25   :  { %892 = vmatprep.subr.bf16.mxu0 %v1020_v0  ;;  %v916_v29 = vpack.c.bf16 %v650_v28, %v649_v27  ;;  %v362_v27 = vld [vmem:[%s1392_s4 + $0x78] sm:$0xff] }
  0x28   :  { %894 = vmatpush1.bf16.msra.mxu0 %v893_v31 }
  0x29   :  { %895 = vmatprep.subr.bf16.mxu0 %v1020_v0 }
  0x2c   :  { %897 = vmatpush1.bf16.msra.mxu0 %v896_v34 }
  0x2d   :  { %898 = vmatprep.subr.bf16.mxu0 %v1020_v0 }
  0x30   :  { %900 = vmatpush1.bf16.msra.mxu0 %v899_v37  ;;  %v207_v37 = vlaneseq }
  0x31   :  { %901 = vmatprep.subr.bf16.mxu0 %v1020_v0 }
  0x32   :  { %v1214_v38 = vshrl.u32 %v207_v37, 7 }
  0x34   :  { %903 = vmatpush1.bf16.msra.mxu0 %v902_v40  ;;  %v1219_v40 = vld [vmem:[%s1393_s2] sm:$0xff] }
  0x35   :  { %120 = vmatprep.subr.mxu0 %v1021_v41 }
  0x38   :  { %121 = vmatpush1.msra.mxu0 %v54_v42  ;;  %v209_v42 = vsub.s32 0, %v1214_v38 }
  0x39   :  { %133 = vmatmul.mubr.f32.vlgmr.msra.gmra.mrb[0].mxu0 %v20_v43  ;;  %913 = vmatprep.subr.bf16.mxu0 %v912_v26 }
  0x3a   :  { %638 = vmatprep.mubr.msk.f32.mxu0 %vm55_vm0, %v23_v44  ;;  %915 = vmatpush3.bf16.msra.mxu0 %v912_v26  ;;  %v361_v26 = vld [vmem:[%s1392_s4 + $0x70] sm:$0xff] }
  0x3b   :  { %917 = vmatprep.subr.bf16.mxu0 %v916_v29  ;;  %v972_v28 = vpack.c.bf16 %v362_v27, %v361_v26 }
  0x3d   :  { %138 = vmatmul.mubr.f32.gmra.mrb[2].mxu0 %v22_v45 }
  0x3e   :  { %639 = vmatprep.mubr.msk.f32.mxu0 %vm55_vm0, %v25_v46  ;;  %919 = vmatpush3.bf16.msra.mxu0 %v916_v29  ;;  %v217_v46 = vsub.s32 1, %v1214_v38  ;;  %v663_v29 = vld [vmem:[%s1392_s4 + $0x100] sm:$0xff] }
  0x41   :  { %143 = vmatmul.mubr.f32.gmra.mrb[4].mxu0 %v24_v47 }
  0x42   :  { %640 = vmatprep.mubr.msk.f32.mxu0 %vm55_vm0, %v27_v48 }
  0x45   :  { %148 = vmatmul.mubr.f32.gmra.mrb[6].mxu0 %v26_v49 }
 0x10c   :  { %v1178_v50 = vpop.f32.mrb[0].mxu0 }
 0x10d   :  { %v136_v51 = vpop.f32.mrb[1].mxu0  ;;  %v162_v53 = vmul.f32 %v1178_v50, %v1178_v50 }
 0x110   :  { %v1180_v52 = vpop.f32.mrb[2].mxu0 }
 0x111   :  { %v153_v54 = vadd.f32 %v1180_v52, %v1178_v50  ;;  %v163_v55 = vmul.f32 %v1180_v52, %v1180_v52  ;;  %v141_v56 = vpop.f32.mrb[3].mxu0 }
 0x113   :  { %v166_v57 = vadd.f32 %v163_v55, %v162_v53 }
 0x114   :  { %v1188_v58 = vpop.f32.mrb[4].mxu0 }
 0x115   :  { %v154_v59 = vadd.f32 %v153_v54, %v1188_v58  ;;  %v164_v60 = vmul.f32 %v1188_v58, %v1188_v58  ;;  %v146_v61 = vpop.f32.mrb[5].mxu0 }
 0x117   :  { %v167_v62 = vadd.f32 %v166_v57, %v164_v60 }
 0x118   :  { %v1193_v63 = vpop.f32.mrb[6].mxu0 }
 0x119   :  { %v155_v0 = vadd.f32 %v154_v59, %v1193_v63  ;;  %v165_v1 = vmul.f32 %v1193_v63, %v1193_v63  ;;  %v151_v2 = vpop.f32.mrb[7].mxu0 }
 0x11b   :  { %v156_v3 = vrot.slane %v155_v0, 4  ;;  %v168_v4 = vadd.f32 %v167_v62, %v165_v1 }
 0x11d   :  { %v157_v5 = vadd.f32 %v156_v3, %v155_v0  ;;  %v169_v6 = vrot.slane %v168_v4, 4 }
 0x11f   :  { %v158_v7 = vrot.slane %v157_v5, 2  ;;  %v170_v8 = vadd.f32 %v169_v6, %v168_v4  ;;  %v350_v4 = vld [vmem:[%s1392_s4 + $0x18] sm:$0xff]  ;;  %v229_v6 = vld [vmem:[%s1391_s3 + $0x10] sm:$0xff] }
 0x121   :  { %v159_v9 = vadd.f32 %v158_v7, %v157_v5  ;;  %v171_v10 = vrot.slane %v170_v8, 2  ;;  %v228_v5 = vld [vmem:[%s1391_s3 + $0x8] sm:$0xff] }
 0x123   :  { %v160_v11 = vrot.slane %v159_v9, 1  ;;  %v172_v12 = vadd.f32 %v171_v10, %v170_v8  ;;  %v351_v8 = vld [vmem:[%s1392_s4 + $0x20] sm:$0xff]  ;;  %v230_v10 = vld [vmem:[%s1391_s3 + $0x18] sm:$0xff] }
 0x125   :  { %v173_v13 = vrot.slane %v172_v12, 1  ;;  %v161_v14 = vadd.f32 %v160_v11, %v159_v9  ;;  %v352_v9 = vld [vmem:[%s1392_s4 + $0x28] sm:$0xff]  ;;  %v231_v11 = vld [vmem:[%s1391_s3 + $0x20] sm:$0xff] }
 0x127   :  { %v174_v15 = vadd.f32 %v173_v13, %v172_v12  ;;  %v952_v12 = vpack.c.bf16 %v352_v9, %v351_v8  ;;  %v353_v13 = vld [vmem:[%s1392_s4 + $0x30] sm:$0xff]  ;;  %v675_v9 = vld [vmem:[%s1392_s4 + $0x160] sm:$0xff] }
 0x129   :  { %v176_v16 = vsel %vm175_vm1, %v161_v14, %v174_v15  ;;  %v354_v14 = vld [vmem:[%s1392_s4 + $0x38] sm:$0xff]  ;;  %v232_v15 = vld [vmem:[%s1391_s3 + $0x28] sm:$0xff] }
 0x12a   :  { %177 = vrot.lane.b32.xlu0 %v176_v16, %s1022_s0 }
 0x19c   :  { %v178_v17 = vpop.permute.xlu0 %177 }
 0x19d   :  { %v179_v18 = vadd.f32 %v178_v17, %v176_v16  ;;  %v956_v16 = vpack.c.bf16 %v354_v14, %v353_v13  ;;  %v355_v17 = vld [vmem:[%s1392_s4 + $0x40] sm:$0xff]  ;;  %v678_v13 = vld [vmem:[%s1392_s4 + $0x178] sm:$0xff] }
 0x19f   :  { %180 = vrot.lane.b32.xlu0 %v179_v18, %s1023_s12 }
 0x211   :  { %v181_v19 = vpop.permute.xlu0 %180 }
 0x212   :  { %v182_v20 = vadd.f32 %v181_v19, %v179_v18  ;;  %v356_v18 = vld [vmem:[%s1392_s4 + $0x48] sm:$0xff] }
 0x213   :  { %v960_v19 = vpack.c.bf16 %v356_v18, %v355_v17  ;;  %v626_v17 = vsub.s32 2, %v1214_v38 }
 0x214   :  { %183 = vrot.lane.b32.xlu1 %v182_v20, %s1024_s13 }
 0x215   :  { %v627_v18 = vrot.slane %v1219_v40, %v626_v17 }
 0x286   :  { %v184_v21 = vpop.permute.xlu1 %183 }
 0x287   :  { %v185_v22 = vadd.f32 %v184_v21, %v182_v20  ;;  %v357_v20 = vld [vmem:[%s1392_s4 + $0x50] sm:$0xff]  ;;  %v358_v21 = vld [vmem:[%s1392_s4 + $0x58] sm:$0xff] }
 0x289   :  { %186 = vrot.lane.b32.xlu1 %v185_v22, %s1025_s14 }
 0x2fb   :  { %v187_v30 = vpop.permute.xlu1 %186 }
 0x2fc   :  { %v188_v31 = vadd.f32 %v187_v30, %v185_v22  ;;  %v964_v22 = vpack.c.bf16 %v358_v21, %v357_v20  ;;  %v664_v30 = vld [vmem:[%s1392_s4 + $0x108] sm:$0xff] }
 0x2fe   :  { %v189_v32 = vmul.f32 0.001953125, %v188_v31  ;;  %v976_v31 = vpack.c.bf16 %v664_v30, %v663_v29 }
 0x300   :  { %v190_v33 = vmul.f32 %v189_v32, %v189_v32 }
 0x302   :  { %v192_v34 = vrot.slane %v190_v33, 7  ;;  %v652_v33 = vld [vmem:[%s1392_s4 + $0xa8] sm:$0xff] }
 0x304   :  { %v194_v35 = vsub.f32 %v189_v32, %v192_v34 }
 0x306   :  { %v196_v36 = vadd.f32 1e-05, %v194_v35  ;;  %v653_v35 = vld [vmem:[%s1392_s4 + $0xb0] sm:$0xff] }
 0x308   :  { %1018 = vrsqrt.f32 %v196_v36  ;;  %v654_v36 = vld [vmem:[%s1392_s4 + $0xb8] sm:$0xff] }
 0x309   :  { %v924_v37 = vpack.c.bf16 %v654_v36, %v653_v35 }
 0x312   :  { %v1019_v39 = vpop.eup %1018 }
 0x313   :  { %v199_v41 = vrot.slane %v1019_v39, 1  ;;  %v655_v39 = vld [vmem:[%s1392_s4 + $0xc0] sm:$0xff] }
 0x315   :  { %v201_v43 = vmul.f32 %v199_v41, %v1219_v40  ;;  %v656_v41 = vld [vmem:[%s1392_s4 + $0xc8] sm:$0xff] }
 0x317   :  { %v202_v44 = vmul.f32 %v201_v43, %v189_v32  ;;  %v210_v45 = vrot.slane %v201_v43, %v209_v42  ;;  %v651_v32 = vld [vmem:[%s1392_s4 + $0xa0] sm:$0xff]  ;;  %v928_v42 = vpack.c.bf16 %v656_v41, %v655_v39  ;;  %v657_v43 = vld [vmem:[%s1392_s4 + $0xd0] sm:$0xff] }
 0x318   :  { %v920_v34 = vpack.c.bf16 %v652_v33, %v651_v32 }
 0x319   :  { %v204_v47 = vrot.slane %v202_v44, 7  ;;  %v211_v49 = vmul.f32 %v210_v45, %v1178_v50  ;;  %v212_v53 = vmul.f32 %v210_v45, %v1180_v52  ;;  %v213_v54 = vmul.f32 %v210_v45, %v1188_v58  ;;  %v347_v50 = vld [vmem:[%s1392_s4] sm:$0xff]  ;;  %v348_v52 = vld [vmem:[%s1392_s4 + $0x8] sm:$0xff]  ;;  %v658_v44 = vld [vmem:[%s1392_s4 + $0xd8] sm:$0xff] }
 0x31a   :  { %v214_v55 = vmul.f32 %v210_v45, %v1193_v63  ;;  %v944_v58 = vpack.c.bf16 %v348_v52, %v347_v50  ;;  %v349_v63 = vld [vmem:[%s1392_s4 + $0x10] sm:$0xff]  ;;  %921 = vmatprep.subr.bf16.mxu0 %v920_v34  ;;  %v932_v45 = vpack.c.bf16 %v658_v44, %v657_v43 }
 0x31b   :  { %v206_v48 = vsub.f32 %v1219_v40, %v204_v47  ;;  %v948_v7 = vpack.c.bf16 %v350_v4, %v349_v63  ;;  %923 = vmatpush3.bf16.msra.mxu0 %v920_v34  ;;  %v660_v47 = vld [vmem:[%s1392_s4 + $0xe8] sm:$0xff]  ;;  %v671_v63 = vld [vmem:[%s1392_s4 + $0x140] sm:$0xff] }
 0x31c   :  { %925 = vmatprep.subr.bf16.mxu0 %v924_v37  ;;  %v672_v4 = vld [vmem:[%s1392_s4 + $0x148] sm:$0xff] }
 0x31d   :  { %v218_v51 = vrot.slane %v206_v48, %v217_v46  ;;  %v659_v46 = vld [vmem:[%s1392_s4 + $0xe0] sm:$0xff] }
 0x31e   :  { %v936_v48 = vpack.c.bf16 %v660_v47, %v659_v46 }
 0x31f   :  { %v219_v56 = vadd.f32 %v218_v51, %v211_v49  ;;  %v220_v57 = vadd.f32 %v218_v51, %v212_v53  ;;  %v221_v59 = vadd.f32 %v218_v51, %v213_v54  ;;  %v222_v60 = vadd.f32 %v218_v51, %v214_v55  ;;  %927 = vmatpush3.bf16.msra.mxu0 %v924_v37  ;;  %v661_v49 = vld [vmem:[%s1392_s4 + $0xf0] sm:$0xff]  ;;  %v662_v51 = vld [vmem:[%s1392_s4 + $0xf8] sm:$0xff] }
 0x320   :  { %929 = vmatprep.subr.bf16.mxu0 %v928_v42  ;;  %v940_v53 = vpack.c.bf16 %v662_v51, %v661_v49  ;;  %v665_v54 = vld [vmem:[%s1392_s4 + $0x110] sm:$0xff]  ;;  %v666_v55 = vld [vmem:[%s1392_s4 + $0x118] sm:$0xff] }
 0x321   :  { %v223_v61 = vmax.f32 %v219_v56, 0.0  ;;  %v224_v62 = vmax.f32 %v220_v57, 0.0  ;;  %v225_v0 = vmax.f32 %v221_v59, 0.0  ;;  %v226_v1 = vmax.f32 %v222_v60, 0.0  ;;  %v667_v60 = vld [vmem:[%s1392_s4 + $0x120] sm:$0xff] }
 0x322   :  { %v980_v59 = vpack.c.bf16 %v666_v55, %v665_v54 }
 0x323   :  { %v904_v2 = vpack.c.bf16 %v224_v62, %v223_v61  ;;  %v908_v3 = vpack.c.bf16 %v226_v1, %v225_v0  ;;  %931 = vmatpush3.bf16.msra.mxu0 %v928_v42  ;;  %v668_v61 = vld [vmem:[%s1392_s4 + $0x128] sm:$0xff] }
 0x324   :  { %933 = vmatprep.subr.bf16.mxu0 %v932_v45  ;;  %v984_v0 = vpack.c.bf16 %v668_v61, %v667_v60 }
 0x325   :  { %905 = vmatprep.subr.bf16.mxu1 %v904_v2 }
 0x326   :  { %907 = vmatpush3.bf16.msra.mxu1 %v904_v2  ;;  %v669_v2 = vld [vmem:[%s1392_s4 + $0x130] sm:$0xff] }
 0x327   :  { %909 = vmatprep.subr.bf16.mxu1 %v908_v3  ;;  %935 = vmatpush3.bf16.msra.mxu0 %v932_v45 }
 0x328   :  { %937 = vmatprep.subr.bf16.mxu0 %v936_v48 }
 0x32a   :  { %911 = vmatpush3.bf16.msra.mxu1 %v908_v3  ;;  %v670_v3 = vld [vmem:[%s1392_s4 + $0x138] sm:$0xff] }
 0x32b   :  { %945 = vmatprep.subr.bf16.mxu1 %v944_v58  ;;  %939 = vmatpush3.bf16.msra.mxu0 %v936_v48  ;;  %v988_v52 = vpack.c.bf16 %v670_v3, %v669_v2 }
 0x32c   :  { %941 = vmatprep.subr.bf16.mxu0 %v940_v53 }
 0x32d   :  { %752 = vmatmul.mubr.msk.f32.vlgmr.msra.gmra.mrb[0].mxu1 %vm233_vm2, %v228_v5  ;;  %v992_v5 = vpack.c.bf16 %v672_v4, %v671_v63 }
 0x32e   :  { %754 = vmatprep.mubr.msk.f32.mxu1 %vm233_vm2, %v229_v6  ;;  %947 = vmatpush3.bf16.msra.mxu1 %v944_v58  ;;  %v673_v6 = vld [vmem:[%s1392_s4 + $0x150] sm:$0xff] }
 0x32f   :  { %949 = vmatprep.subr.bf16.mxu1 %v948_v7  ;;  %943 = vmatpush3.bf16.msra.mxu0 %v940_v53 }
 0x331   :  { %755 = vmatmul.mubr.msk.f32.gmra.mrb[2].mxu1 %vm233_vm2, %v230_v10  ;;  %v676_v10 = vld [vmem:[%s1392_s4 + $0x168] sm:$0xff] }
 0x332   :  { %757 = vmatprep.mubr.msk.f32.mxu1 %vm233_vm2, %v231_v11  ;;  %951 = vmatpush3.bf16.msra.mxu1 %v948_v7  ;;  %v674_v7 = vld [vmem:[%s1392_s4 + $0x158] sm:$0xff]  ;;  %v1000_v11 = vpack.c.bf16 %v676_v10, %v675_v9 }
 0x333   :  { %953 = vmatprep.subr.bf16.mxu1 %v952_v12  ;;  %v996_v8 = vpack.c.bf16 %v674_v7, %v673_v6 }
 0x335   :  { %758 = vmatmul.mubr.msk.f32.gmra.mrb[4].mxu1 %vm233_vm2, %v232_v15 }
 0x336   :  { %955 = vmatpush3.bf16.msra.mxu1 %v952_v12  ;;  %v677_v12 = vld [vmem:[%s1392_s4 + $0x170] sm:$0xff] }
 0x337   :  { %957 = vmatprep.subr.bf16.mxu1 %v956_v16  ;;  %v1004_v14 = vpack.c.bf16 %v678_v13, %v677_v12 }
 0x33a   :  { %959 = vmatpush3.bf16.msra.mxu1 %v956_v16 }
 0x33b   :  { %961 = vmatprep.subr.bf16.mxu1 %v960_v19 }
 0x33e   :  { %963 = vmatpush3.bf16.msra.mxu1 %v960_v19 }
 0x33f   :  { %965 = vmatprep.subr.bf16.mxu1 %v964_v22 }
 0x342   :  { %967 = vmatpush3.bf16.msra.mxu1 %v964_v22 }
 0x343   :  { %969 = vmatprep.subr.bf16.mxu1 %v968_v25 }
 0x346   :  { %971 = vmatpush3.bf16.msra.mxu1 %v968_v25 }
 0x347   :  { %973 = vmatprep.subr.bf16.mxu1 %v972_v28 }
 0x34a   :  { %975 = vmatpush3.bf16.msra.mxu1 %v972_v28 }
 0x34b   :  { %977 = vmatprep.subr.bf16.mxu1 %v976_v31 }
 0x400   :  { %v753_v56 = vpop.f32.mrb[0].mxu1 }
 0x401   :  { %v318_v57 = vpop.f32.mrb[1].mxu1 }
 0x402   :  { %827 = vmatprep.mubr.f32.mxu1 %v318_v57 }
 0x403   :  { %828 = vmatmul.mubr.f32.vlgmr.msra.gmra.mrb[6].mxu1 %v753_v56 }
 0x404   :  { %979 = vmatpush3.bf16.msra.mxu1 %v976_v31  ;;  %v756_v62 = vpop.f32.mrb[2].mxu1 }
 0x405   :  { %981 = vmatprep.subr.bf16.mxu1 %v980_v59  ;;  %v328_v1 = vpop.f32.mrb[3].mxu1 }
 0x406   :  { %792 = vmatprep.mubr.f32.mxu0 %v328_v1 }
 0x407   :  { %793 = vmatmul.mubr.f32.vlgmr.msra.gmra.mrb[8].mxu0 %v756_v62 }
 0x408   :  { %983 = vmatpush3.bf16.msra.mxu1 %v980_v59  ;;  %v759_v50 = vpop.f32.mrb[4].mxu1 }
 0x409   :  { %985 = vmatprep.subr.bf16.mxu1 %v984_v0  ;;  %v338_v58 = vpop.f32.mrb[5].mxu1 }
 0x40a   :  { %862 = vmatprep.mubr.f32.mxu1 %v338_v58 }
 0x40c   :  { %987 = vmatpush3.bf16.msra.mxu1 %v984_v0 }
 0x40d   :  { %989 = vmatprep.subr.bf16.mxu1 %v988_v52 }
 0x410   :  { %991 = vmatpush3.bf16.msra.mxu1 %v988_v52 }
 0x411   :  { %993 = vmatprep.subr.bf16.mxu1 %v992_v5 }
 0x414   :  { %995 = vmatpush3.bf16.msra.mxu1 %v992_v5 }
 0x415   :  { %997 = vmatprep.subr.bf16.mxu1 %v996_v8 }
 0x418   :  { %999 = vmatpush3.bf16.msra.mxu1 %v996_v8 }
 0x419   :  { %1001 = vmatprep.subr.bf16.mxu1 %v1000_v11 }
 0x41c   :  { %1003 = vmatpush3.bf16.msra.mxu1 %v1000_v11 }
 0x41d   :  { %1005 = vmatprep.subr.bf16.mxu1 %v1004_v14 }
 0x420   :  { %1007 = vmatpush3.bf16.msra.mxu1 %v1004_v14 }
 0x423   :  { %863 = vmatmul.mubr.f32.vlgmr.msra.gmra.mrb[6].mxu1 %v759_v50 }
 0x4da   :  { %v794_v15 = vpop.f32.mrb[8].mxu0 }
 0x4db   :  { %v446_v16 = vpop.f32.mrb[9].mxu0 }
 0x4f6   :  { %v864_v19 = vpop.f32.mrb[6].mxu1 }
 0x4f7   :  { %v1008_v20 = vadd.f32 %v864_v19, %v794_v15  ;;  %v613_v21 = vpop.f32.mrb[7].mxu1 }
 0x4f8   :  { %v1009_v22 = vadd.f32 %v613_v21, %v446_v16 }
 0x4f9   :  { %v629_v23 = vadd.f32 %v1008_v20, %v627_v18 }
 0x4fa   :  { %v628_v24 = vadd.f32 %v1009_v22, %v627_v18 }
 0x4fb   :  { %632 = vst.msk [vmem:[%s1394_s5 + $0x8] sm:$0xff] %vm630_vm3, %v629_v23 }
 0x4fc   :  { %631 = vst.msk [vmem:[%s1394_s5] sm:$0xff] %vm630_vm3, %v628_v24 }

</bundles_post_ra>
